<compile_context>
chip_gen: v7x
topology: tpu7x:2x2x1
jax: 0.10.0
libtpu: 0.0.40
codegen_flags: <defaults>
</compile_context>

<pallas_src>
import math

import jax
import jax.numpy as jnp
from jax import lax
from jax.experimental import pallas as pl
from jax.experimental.pallas import tpu as pltpu

_INV_SQRT2 = 1.0 / math.sqrt(2.0)


def _gelu_exact(h):
    # Exact (erf-based) GELU in f32 — matches torch.nn.GELU() default.
    # TODO(synk): if torch-exact GELU is not required, the tanh approximation
    # offloads work to the EUP slot and is nearly free on v6e/v7x.
    return 0.5 * h * (1.0 + lax.erf(h * _INV_SQRT2))


# ----------------------------- kernels ------------------------------------ #

def _mlp_kernel_resident(x_ref, w1_ref, b1_ref, w2_ref, b2_ref, o_ref):
    # Weights fully resident in VMEM; one grid step per row tile.
    # x_ref : (tm, Din_p)   w1_ref: (Din_p, H_p)   b1_ref: (1, H_p)
    # w2_ref: (H_p, Dout_p) b2_ref: (1, Dout_p)    o_ref : (tm, Dout_p)
    h = jnp.dot(x_ref[...], w1_ref[...], preferred_element_type=jnp.float32)
    h = _gelu_exact(h + b1_ref[...].astype(jnp.float32))
    y = jnp.dot(h.astype(w2_ref.dtype), w2_ref[...],
                preferred_element_type=jnp.float32)
    o_ref[...] = (y + b2_ref[...].astype(jnp.float32)).astype(o_ref.dtype)


def _mlp_kernel_streaming(x_ref, w1_ref, b1_ref, w2_ref, b2_ref, o_ref, acc_ref):
    # Hidden dim streamed in th-sized chunks; f32 accumulator scratch (P3).
    hk = pl.program_id(1)

    @pl.when(hk == 0)
    def _():
        acc_ref[...] = jnp.zeros_like(acc_ref)

    h = jnp.dot(x_ref[...], w1_ref[...], preferred_element_type=jnp.float32)
    h = _gelu_exact(h + b1_ref[...].astype(jnp.float32))
    acc_ref[...] += jnp.dot(h.astype(w2_ref.dtype), w2_ref[...],
                            preferred_element_type=jnp.float32)

    @pl.when(hk == pl.num_programs(1) - 1)
    def _():
        o_ref[...] = (acc_ref[...] + b2_ref[...].astype(jnp.float32)).astype(
            o_ref.dtype)


# ----------------------------- wrapper ------------------------------------ #

def _round_up(x, m):
    return ((x + m - 1) // m) * m


def _pad2(a, rows, cols):
    pr, pc = rows - a.shape[0], cols - a.shape[1]
    if pr or pc:
        a = jnp.pad(a, ((0, pr), (0, pc)))
    return a


def _maybe_cast(a, dtype):
    dtype = jnp.dtype(dtype)
    return a if a.dtype == dtype else a.astype(dtype)


def _vmem_budget_bytes():
    # Generation-aware VMEM budget with ~20% headroom for Mosaic scratch.
    try:
        cap = int(pltpu.get_tpu_info().vmem_capacity_bytes)
    except Exception:
        cap = 64 << 20  # conservative fallback (v7x per-TC VMEM)
    return int(cap * 0.8)


def mlp_pallas(x, w1, b1, w2, b2, *, tm=None, th=None,
               compute_dtype=jnp.bfloat16):
    """x: (B, N, Din); w1: (Din, H); b1: (H,); w2: (H, Dout); b2: (Dout,).

    Returns (B, N, Dout) in x.dtype.  MXU inputs are cast to `compute_dtype`
    (default bfloat16); accumulation is always f32.  Passing `th` forces the
    hidden-dim streaming path.
    """
    B, N, Din = x.shape
    H = w1.shape[1]
    Dout = w2.shape[1]
    M = B * N

    out_dtype = x.dtype
    compute_dtype = jnp.dtype(compute_dtype)
    c_item = compute_dtype.itemsize
    o_item = jnp.dtype(out_dtype).itemsize

    # Lane-dense feature padding (multiples of 128).
    Din_p = _round_up(Din, 128)
    Dout_p = _round_up(Dout, 128)
    H_p128 = _round_up(H, 128)

    budget = _vmem_budget_bytes()
    m_sub = _round_up(max(M, 1), 16)  # sublane-friendly row count (f32 & bf16)

    # Weight-resident mode: padded W1+W2 (+biases) must fit in <= 1/3 of the
    # budget (leaves room for conservative double-buffering + row tiles).
    w_bytes = (Din_p * H_p128 + H_p128 * Dout_p) * c_item + (H_p128 + Dout_p) * 4
    resident = (th is None) and (w_bytes <= budget // 3)

    if resident:
        H_p = H_p128
        th_eff = H_p
        leftover = max(budget - 2 * w_bytes, 1 << 20)
        per_row = (2 * Din_p * c_item          # x tile (double-buffered)
                   + 2 * Dout_p * o_item       # out tile (double-buffered)
                   + H_p * 4 + H_p * c_item)   # f32 hidden + cast copy
        tm_cap = max((leftover // per_row) // 16 * 16, 16)
        tm_pref = tm if tm is not None else 512
        tm_eff = max(16, (min(tm_pref, tm_cap, m_sub) // 16) * 16)
        # Keep >= 2 row tiles for medium/large M (v7x has 2 TensorCores).
        if M >= 256 and m_sub <= tm_eff:
            tm_eff = max(16, _round_up((M + 1) // 2, 16))
    else:
        # Streaming path: pick hidden chunk size that minimizes padding.
        th_pref = th if th is not None else 1024
        nk = pl.cdiv(H_p128, min(th_pref, H_p128))
        th_eff = _round_up(pl.cdiv(H_p128, nk), 128)
        H_p = nk * th_eff
        tm_pref = tm if tm is not None else (1024 if budget >= (96 << 20) else 512)
        tm_eff = max(16, (min(tm_pref, m_sub) // 16) * 16)
        if M >= 256 and m_sub <= tm_eff:
            tm_eff = max(16, _round_up((M + 1) // 2, 16))

        def _need(tm_):
            return (2 * tm_ * Din_p * c_item          # x tiles
                    + 2 * Din_p * th_eff * c_item     # w1 chunks
                    + 2 * th_eff * Dout_p * c_item    # w2 chunks
                    + 2 * tm_ * Dout_p * o_item       # out tiles
                    + tm_ * Dout_p * 4                # f32 accumulator
                    + tm_ * th_eff * (4 + c_item)     # hidden intermediate
                    + 2 * (th_eff + Dout_p) * 4)      # biases

        while tm_eff > 16 and _need(tm_eff) > budget:
            tm_eff = max(16, ((tm_eff // 2) // 16) * 16)

    M_p = _round_up(M, tm_eff)

    # Host-side prep — zero-copy when dtypes/shapes already line up.
    x2 = _pad2(_maybe_cast(x.reshape(M, Din), compute_dtype), M_p, Din_p)
    w1p = _pad2(_maybe_cast(w1, compute_dtype), Din_p, H_p)
    w2p = _pad2(_maybe_cast(w2, compute_dtype), H_p, Dout_p)
    b1p = _pad2(_maybe_cast(b1.reshape(1, H), jnp.float32), 1, H_p)
    b2p = _pad2(_maybe_cast(b2.reshape(1, Dout), jnp.float32), 1, Dout_p)
    # TODO(synk): for repeated calls, hoist the weight cast/pad to param setup.

    vmem_limit = int(budget)

    if resident:
        grid = (M_p // tm_eff,)
        out = pl.pallas_call(
            _mlp_kernel_resident,
            out_shape=jax.ShapeDtypeStruct((M_p, Dout_p), out_dtype),
            grid_spec=pltpu.PrefetchScalarGridSpec(
                num_scalar_prefetch=0,
                grid=grid,
                in_specs=[
                    pl.BlockSpec((tm_eff, Din_p), lambda i: (i, 0)),   # x rows
                    pl.BlockSpec((Din_p, H_p), lambda i: (0, 0)),      # w1 (resident)
                    pl.BlockSpec((1, H_p), lambda i: (0, 0)),          # b1
                    pl.BlockSpec((H_p, Dout_p), lambda i: (0, 0)),     # w2 (resident)
                    pl.BlockSpec((1, Dout_p), lambda i: (0, 0)),       # b2
                ],
                out_specs=pl.BlockSpec((tm_eff, Dout_p), lambda i: (i, 0)),
            ),
            compiler_params=pltpu.CompilerParams(
                dimension_semantics=("parallel",),
                vmem_limit_bytes=vmem_limit,
            ),
        )(x2, w1p, b1p, w2p, b2p)
    else:
        grid = (M_p // tm_eff, H_p // th_eff)
        out = pl.pallas_call(
            _mlp_kernel_streaming,
            out_shape=jax.ShapeDtypeStruct((M_p, Dout_p), out_dtype),
            grid_spec=pltpu.PrefetchScalarGridSpec(
                num_scalar_prefetch=0,
                grid=grid,
                in_specs=[
                    pl.BlockSpec((tm_eff, Din_p), lambda i, k: (i, 0)),   # x rows
                    pl.BlockSpec((Din_p, th_eff), lambda i, k: (0, k)),   # w1 chunk
                    pl.BlockSpec((1, th_eff), lambda i, k: (0, k)),       # b1 chunk
                    pl.BlockSpec((th_eff, Dout_p), lambda i, k: (k, 0)),  # w2 chunk
                    pl.BlockSpec((1, Dout_p), lambda i, k: (0, 0)),       # b2
                ],
                out_specs=pl.BlockSpec((tm_eff, Dout_p), lambda i, k: (i, 0)),
                scratch_shapes=[pltpu.VMEM((tm_eff, Dout_p), jnp.float32)],
            ),
            compiler_params=pltpu.CompilerParams(
                dimension_semantics=("parallel", "arbitrary"),
                vmem_limit_bytes=vmem_limit,
            ),
        )(x2, w1p, b1p, w2p, b2p)

    if M_p != M or Dout_p != Dout:
        out = out[:M, :Dout]
    return out.reshape(B, N, Dout)


# ----------------------------- reference / tests --------------------------- #

def mlp_reference(x, w1, b1, w2, b2):
    h = jnp.einsum("bnd,dh->bnh", x, w1, precision=lax.Precision.HIGHEST) + b1
    h = jax.nn.gelu(h, approximate=False)
    y = jnp.einsum("bnh,ho->bno", h, w2, precision=lax.Precision.HIGHEST) + b2
    return y


def _make_params(key, din, hidden, dout):
    kw1, kb1, kw2, kb2 = jax.random.split(key, 4)
    lim1 = 1.0 / math.sqrt(din)
    w1 = jax.random.uniform(kw1, (din, hidden), minval=-lim1, maxval=lim1,
                            dtype=jnp.float32)
    b1 = jax.random.uniform(kb1, (hidden,), minval=-lim1, maxval=lim1,
                            dtype=jnp.float32)
    lim2 = 1.0 / math.sqrt(hidden)
    w2 = jax.random.uniform(kw2, (hidden, dout), minval=-lim2, maxval=lim2,
                            dtype=jnp.float32)
    b2 = jax.random.uniform(kb2, (dout,), minval=-lim2, maxval=lim2,
                            dtype=jnp.float32)
    return w1, b1, w2, b2


if __name__ == "__main__":
    key = jax.random.PRNGKey(0)

    # --- test 1: small ViT-like Mlp, single row tile, resident weights ---
    B, N = 2, 8
    din, hid, dout = 32, 64, 32
    k1, k2, key = jax.random.split(key, 3)
    x = jax.random.normal(k1, (B, N, din), dtype=jnp.float32)
    w1, b1, w2, b2 = _make_params(k2, din, hid, dout)
    y_ref = mlp_reference(x, w1, b1, w2, b2)

    y_bf = mlp_pallas(x, w1, b1, w2, b2)                     # default: bf16 MXU inputs
    jax.block_until_ready(y_bf)
    assert y_bf.shape == (B, N, dout)
    assert jnp.allclose(y_bf, y_ref, atol=5e-2, rtol=5e-2), "bf16 small mismatch"

    y_f32 = mlp_pallas(x, w1, b1, w2, b2, compute_dtype=jnp.float32)
    jax.block_until_ready(y_f32)
    assert jnp.allclose(y_f32, y_ref, atol=1e-4, rtol=1e-4), "f32 small mismatch"

    # --- test 2: non-divisible row count, multiple row tiles, resident weights ---
    B2, N2 = 2, 200                      # M = 400 (not a multiple of the row tile)
    din2, h2, dout2 = 192, 640, 192
    k3, k4 = jax.random.split(key, 2)
    x2 = jax.random.normal(k3, (B2, N2, din2), dtype=jnp.float32)
    w1b, b1b, w2b, b2b = _make_params(k4, din2, h2, dout2)
    y2_ref = mlp_reference(x2, w1b, b1b, w2b, b2b)

    y2 = mlp_pallas(x2, w1b, b1b, w2b, b2b, compute_dtype=jnp.float32)
    jax.block_until_ready(y2)
    assert y2.shape == (B2, N2, dout2)
    assert jnp.allclose(y2, y2_ref, atol=1e-4, rtol=1e-4), "f32 large mismatch"

    y2_bf = mlp_pallas(x2, w1b, b1b, w2b, b2b)
    jax.block_until_ready(y2_bf)
    assert jnp.allclose(y2_bf, y2_ref, atol=6e-2, rtol=6e-2), "bf16 large mismatch"

    # --- test 3: force the hidden-dim streaming path (chunked reduction) ---
    y3 = mlp_pallas(x2, w1b, b1b, w2b, b2b, th=256, compute_dtype=jnp.float32)
    jax.block_until_ready(y3)
    assert jnp.allclose(y3, y2_ref, atol=1e-4, rtol=1e-4), "f32 streaming mismatch"

    y3_bf = mlp_pallas(x2, w1b, b1b, w2b, b2b, th=256)
    jax.block_until_ready(y3_bf)
    assert jnp.allclose(y3_bf, y2_ref, atol=6e-2, rtol=6e-2), "bf16 streaming mismatch"

    print("KERNEL_OK")
</pallas_src>

<mosaic_0001>
module attributes {stable_mosaic.version = 11 : i64} {
  func.func @_mlp_kernel_resident(%arg0: i32, %arg1: memref<16x128xbf16, #tpu.memory_space<vmem>>, %arg2: memref<128x128xbf16, #tpu.memory_space<vmem>>, %arg3: memref<1x128xf32, #tpu.memory_space<vmem>>, %arg4: memref<128x128xbf16, #tpu.memory_space<vmem>>, %arg5: memref<1x128xf32, #tpu.memory_space<vmem>>, %arg6: memref<16x128xf32, #tpu.memory_space<vmem>>) attributes {dimension_semantics = [#tpu.dimension_semantics<parallel>], iteration_bounds = array<i64: 1>, scalar_prefetch = 0 : i64, scratch_operands = 0 : i64, tpu.core_type = #tpu.core_type<tc>, window_params = [{transform_indices = @transform_0, window_bounds = array<i64: 16, 128>}, {pipeline_mode = #tpu.pipeline_mode<synchronous>, transform_indices = @transform_1, window_bounds = array<i64: 128, 128>}, {pipeline_mode = #tpu.pipeline_mode<synchronous>, transform_indices = @transform_2, window_bounds = array<i64: 1, 128>}, {pipeline_mode = #tpu.pipeline_mode<synchronous>, transform_indices = @transform_3, window_bounds = array<i64: 128, 128>}, {pipeline_mode = #tpu.pipeline_mode<synchronous>, transform_indices = @transform_4, window_bounds = array<i64: 1, 128>}, {transform_indices = @transform_5, window_bounds = array<i64: 16, 128>}]} {
    %c0 = arith.constant 0 : index
    %c0_0 = arith.constant 0 : index
    %0 = vector.load %arg1[%c0, %c0_0] : memref<16x128xbf16, #tpu.memory_space<vmem>>, vector<16x128xbf16>
    %c0_1 = arith.constant 0 : index
    %c0_2 = arith.constant 0 : index
    %1 = vector.load %arg2[%c0_1, %c0_2] : memref<128x128xbf16, #tpu.memory_space<vmem>>, vector<128x128xbf16>
    %cst = arith.constant dense<0.000000e+00> : vector<16x128xf32>
    %2 = tpu.matmul %0, %1, %cst {dimension_numbers = #tpu.dot_dimension_numbers<[1], [0], [0], [1], [0, 0, 1, 1], [], []>} : vector<16x128xbf16>, vector<128x128xbf16>, vector<16x128xf32> -> vector<16x128xf32>
    %c0_3 = arith.constant 0 : index
    %c0_4 = arith.constant 0 : index
    %3 = vector.load %arg3[%c0_3, %c0_4] : memref<1x128xf32, #tpu.memory_space<vmem>>, vector<1x128xf32>
    %4 = vector.broadcast %3 : vector<1x128xf32> to vector<16x128xf32>
    %5 = arith.addf %2, %4 : vector<16x128xf32>
    %cst_5 = arith.constant 5.000000e-01 : f32
    %6 = vector.broadcast %cst_5 : f32 to vector<16x128xf32>
    %7 = arith.mulf %6, %5 : vector<16x128xf32>
    %cst_6 = arith.constant 0.707106769 : f32
    %8 = vector.broadcast %cst_6 : f32 to vector<16x128xf32>
    %9 = arith.mulf %5, %8 : vector<16x128xf32>
    %10 = math.erf %9 : vector<16x128xf32>
    %cst_7 = arith.constant 1.000000e+00 : f32
    %11 = vector.broadcast %cst_7 : f32 to vector<16x128xf32>
    %12 = arith.addf %11, %10 : vector<16x128xf32>
    %13 = arith.mulf %7, %12 : vector<16x128xf32>
    %14 = arith.truncf %13 : vector<16x128xf32> to vector<16x128xbf16>
    %c0_8 = arith.constant 0 : index
    %c0_9 = arith.constant 0 : index
    %15 = vector.load %arg4[%c0_8, %c0_9] : memref<128x128xbf16, #tpu.memory_space<vmem>>, vector<128x128xbf16>
    %cst_10 = arith.constant dense<0.000000e+00> : vector<16x128xf32>
    %16 = tpu.matmul %14, %15, %cst_10 {dimension_numbers = #tpu.dot_dimension_numbers<[1], [0], [0], [1], [0, 0, 1, 1], [], []>} : vector<16x128xbf16>, vector<128x128xbf16>, vector<16x128xf32> -> vector<16x128xf32>
    %c0_11 = arith.constant 0 : index
    %c0_12 = arith.constant 0 : index
    %17 = vector.load %arg5[%c0_11, %c0_12] : memref<1x128xf32, #tpu.memory_space<vmem>>, vector<1x128xf32>
    %18 = vector.broadcast %17 : vector<1x128xf32> to vector<16x128xf32>
    %19 = arith.addf %16, %18 : vector<16x128xf32>
    %c0_13 = arith.constant 0 : index
    %c0_14 = arith.constant 0 : index
    %20 = vector.load %arg6[%c0_13, %c0_14] : memref<16x128xf32, #tpu.memory_space<vmem>>, vector<16x128xf32>
    tpu.vector_store %arg6[%c0_13, %c0_14], %19 {strides = array<i32>} : memref<16x128xf32, #tpu.memory_space<vmem>>, vector<16x128xf32>,
    return
  }
  func.func @transform_0(%arg0: i32) -> (i32, i32) {
    %c0_i32 = arith.constant 0 : i32
    %c0_i32_0 = arith.constant 0 : i32
    return %arg0, %c0_i32 : i32, i32
  }
  func.func @transform_1(%arg0: i32) -> (i32, i32) {
    %c0_i32 = arith.constant 0 : i32
    %c0_i32_0 = arith.constant 0 : i32
    %c0_i32_1 = arith.constant 0 : i32
    return %c0_i32, %c0_i32_0 : i32, i32
  }
  func.func @transform_2(%arg0: i32) -> (i32, i32) {
    %c0_i32 = arith.constant 0 : i32
    %c0_i32_0 = arith.constant 0 : i32
    %c0_i32_1 = arith.constant 0 : i32
    return %c0_i32, %c0_i32_0 : i32, i32
  }
  func.func @transform_3(%arg0: i32) -> (i32, i32) {
    %c0_i32 = arith.constant 0 : i32
    %c0_i32_0 = arith.constant 0 : i32
    %c0_i32_1 = arith.constant 0 : i32
    return %c0_i32, %c0_i32_0 : i32, i32
  }
  func.func @transform_4(%arg0: i32) -> (i32, i32) {
    %c0_i32 = arith.constant 0 : i32
    %c0_i32_0 = arith.constant 0 : i32
    %c0_i32_1 = arith.constant 0 : i32
    return %c0_i32, %c0_i32_0 : i32, i32
  }
  func.func @transform_5(%arg0: i32) -> (i32, i32) {
    %c0_i32 = arith.constant 0 : i32
    %c0_i32_0 = arith.constant 0 : i32
    return %arg0, %c0_i32 : i32, i32
  }
}

</mosaic_0001>

<bundles_post_ra>
// kernel: tpu_custom_call.1
= control target key start
LH: loop header
LB: loop body
LE: loop exit
PB: predicated region body
PF: predicated region fallthrough
CT: control target
= control target key end

     0   :  { %10 = vsyncpa [#allocation3], 0  ;;  %s638_s0 = inlined_call_operand.hbm [shape: bf16[16,128], index: 0, kind: input, shape index: {}]   ;;  %s639_s1 = inlined_call_operand.hbm [shape: bf16[128,128], index: 1, kind: input, shape index: {}]   ;;  %s640_s2 = inlined_call_operand.vmem [shape: f32[1,128], index: 2, kind: input, shape index: {}]   ;;  %s641_s3 = inlined_call_operand.hbm [shape: bf16[128,128], index: 3, kind: input, shape index: {}]   ;;  %s642_s4 = inlined_call_operand.vmem [shape: f32[1,128], index: 4, kind: input, shape index: {}]   ;;  %s643_s5 = inlined_call_operand.hbm [shape: f32[16,128], index: 5, kind: output, shape index: {}]  }
   0x1   :  { %11 = vsyncpa [#allocation6], 0 }
   0x2   :  { %12 = vsyncpa [#allocation4], 0  ;;  %s528_s18 = smov [#allocation5]   ;;  %s529_s20 = smov [#allocation2]  }
   0x3   :  { %s30_s19 = sshll.u32 %s528_s18, 4  ;;  %s18_s21 = sshll.u32 %s529_s20, 4  ;;  %s31_s19 = int_to_ptr.vmem [resolvable:$true] %s30_s19  ;;  %s568_s21 = int_to_ptr.vmem [resolvable:$true] %s18_s21 }
   0x4   :  { %s434_s24 = scalar_lea.hbm %s639_s1, 1024 }
   0x5   :  { %p435_p0 = scmp.ne.s32.totalorder %s639_s1, %s434_s24  ;;  %p438_p1 = scmp.lt.u32.totalorder %s434_s24, %s639_s1 }
   0x7   :  { %p440_p2 = pnand %p438_p1, %p435_p0 }
   0x9   :  { %443 = shalt.err (!%p440_p2)
}
   0xa   :  { %s444_s29 = scalar_lea.vmem %s31_s19, 1024  ;;  %p449_p4 = scmp.lt.s32.totalorder %s31_s19, %s31_s19 }
   0xb   :  { %p445_p3 = scmp.ne.s32.totalorder %s31_s19, %s444_s29  ;;  %p450_p5 = scmp.lt.s32.totalorder %s444_s29, %s444_s29 }
   0xd   :  { %p451_p6 = por %p450_p5, %p449_p4 }
   0xf   :  { %p452_p7 = pnand %p451_p6, %p445_p3 }
  0x11   :  { %455 = shalt.err (!%p452_p7)
}
  0x12   :  { %s530_s30 = smov 64   ;;  %s531_s6 = smov 4  }
  0x13   :  { %36 = dma.hbm_to_vmem [thread:$0]  %s639_s1, 1024, %s31_s19, [#allocation6], %s530_s30, %s530_s30, %s531_s6  }
  0x14   :  { %s456_s11 = scalar_lea.hbm %s638_s0, 128 }
  0x15   :  { %p457_p8 = scmp.ne.s32.totalorder %s638_s0, %s456_s11  ;;  %p460_p9 = scmp.lt.u32.totalorder %s456_s11, %s638_s0 }
  0x17   :  { %p462_p10 = pnand %p460_p9, %p457_p8 }
  0x19   :  { %465 = shalt.err (!%p462_p10)
}
  0x1a   :  { %s466_s16 = scalar_lea.vmem %s568_s21, 128  ;;  %p471_p12 = scmp.lt.s32.totalorder %s568_s21, %s568_s21 }
  0x1b   :  { %p467_p11 = scmp.ne.s32.totalorder %s568_s21, %s466_s16  ;;  %p472_p13 = scmp.lt.s32.totalorder %s466_s16, %s466_s16 }
  0x1d   :  { %p473_p0 = por %p472_p13, %p471_p12 }
  0x1f   :  { %p474_p1 = pnand %p473_p0, %p467_p11 }
  0x21   :  { %477 = shalt.err (!%p474_p1)
}
  0x22   :  { %24 = dma.hbm_to_vmem [thread:$0]  %s638_s0, 128, %s568_s21, [#allocation3], %s530_s30, %s530_s30, %s531_s6  }
  0x23   :  { %s532_s18 = smov [#allocation7]   ;;  %s478_s23 = scalar_lea.hbm %s641_s3, 1024 }
  0x24   :  { %s44_s19 = sshll.u32 %s532_s18, 4  ;;  %p479_p2 = scmp.ne.s32.totalorder %s641_s3, %s478_s23  ;;  %s45_s19 = int_to_ptr.vmem [resolvable:$true] %s44_s19 }
  0x25   :  { %p482_p3 = scmp.lt.u32.totalorder %s478_s23, %s641_s3 }
  0x27   :  { %p484_p4 = pnand %p482_p3, %p479_p2 }
  0x29   :  { %487 = shalt.err (!%p484_p4)
}
  0x2a   :  { %s488_s28 = scalar_lea.vmem %s45_s19, 1024  ;;  %p493_p6 = scmp.lt.s32.totalorder %s45_s19, %s45_s19 }
  0x2b   :  { %p489_p5 = scmp.ne.s32.totalorder %s45_s19, %s488_s28  ;;  %p494_p7 = scmp.lt.s32.totalorder %s488_s28, %s488_s28 }
  0x2d   :  { %p495_p8 = por %p494_p7, %p493_p6 }
  0x2f   :  { %p496_p9 = pnand %p495_p8, %p489_p5 }
  0x31   :  { %499 = shalt.err (!%p496_p9)
}
  0x32   :  { %50 = dma.hbm_to_vmem [thread:$0]  %s641_s3, 1024, %s45_s19, [#allocation6], %s530_s30, %s530_s30, %s531_s6  }
  0x33   :  { %522 = dma.done.wait [#allocation3], 128  }
  0x34   :  { %523 = vsyncadd [#allocation3], 4294967168 }
  0x35   :  { %524 = dma.done.wait [#allocation6], 2048  }
  0x36   :  { %525 = vsyncadd [#allocation6], 4294965248  ;;  %v533_v0 = vmov 0.0   ;;  %vm534_vm0 = vmmov 0   ;;  %v413_v1 = vld [vmem:[#allocation5] sm:$0xff]   ;;  %v414_v2 = vld [vmem:[#allocation5 + $0x8] sm:$0xff]  }
  0x37   :  { %363 = vmatprep.subr.bf16.mxu0 %v533_v0  ;;  %379 = vmatprep.mubr.msk.bf16.mxu0 %vm534_vm0, %v533_v0  ;;  %v415_v3 = vld [vmem:[#allocation5 + $0x10] sm:$0xff]   ;;  %v422_v4 = vld [vmem:[#allocation7] sm:$0xff]   ;;  %v416_v5 = vld [vmem:[#allocation5 + $0x18] sm:$0xff]   ;;  %s535_s6 = smov [#allocation8]  }
  0x38   :  { %383 = vmatprep.subr.bf16.mxu1 %v533_v0  ;;  %399 = vmatprep.mubr.msk.bf16.mxu1 %vm534_vm0, %v533_v0  ;;  %v423_v6 = vld [vmem:[#allocation7 + $0x8] sm:$0xff]   ;;  %v417_v7 = vld [vmem:[#allocation5 + $0x20] sm:$0xff]   ;;  %v419_v9 = vld [vmem:[#allocation5 + $0x30] sm:$0xff]   ;;  %s313_s7 = sshll.u32 %s535_s6, 4  ;;  %s314_s7 = int_to_ptr.vmem [resolvable:$true] %s313_s7 }
  0x39   :  { %364 = vmatpush3.bf16.msra.mxu0 %v413_v1  ;;  %384 = vmatpush3.bf16.msra.mxu1 %v422_v4  ;;  %v418_v8 = vld [vmem:[#allocation5 + $0x28] sm:$0xff]   ;;  %v420_v10 = vld [vmem:[#allocation5 + $0x38] sm:$0xff]   ;;  %v424_v12 = vld [vmem:[#allocation7 + $0x10] sm:$0xff]   ;;  %s500_s8 = scalar_lea.vmem %s314_s7, 256  ;;  %p505_p11 = scmp.lt.s32.totalorder %s314_s7, %s314_s7 }
  0x3a   :  { %365 = vmatprep.subr.bf16.mxu0 %v533_v0  ;;  %385 = vmatprep.subr.bf16.mxu1 %v533_v0  ;;  %v421_v11 = vld [vmem:[#allocation2] sm:$0xff]   ;;  %v426_v14 = vld [vmem:[#allocation7 + $0x20] sm:$0xff]   ;;  %v427_v15 = vld [vmem:[#allocation7 + $0x28] sm:$0xff]   ;;  %p501_p10 = scmp.ne.s32.totalorder %s314_s7, %s500_s8  ;;  %p506_p12 = scmp.lt.s32.totalorder %s500_s8, %s500_s8 }
  0x3b   :  { %v425_v13 = vld [vmem:[#allocation7 + $0x18] sm:$0xff]   ;;  %v428_v16 = vld [vmem:[#allocation7 + $0x30] sm:$0xff]  }
  0x3c   :  { %v429_v17 = vld [vmem:[#allocation7 + $0x38] sm:$0xff]   ;;  %p507_p13 = por %p506_p12, %p505_p11 }
  0x3d   :  { %366 = vmatpush3.bf16.msra.mxu0 %v414_v2  ;;  %386 = vmatpush3.bf16.msra.mxu1 %v423_v6  ;;  %v326_v18 = vld [vmem:[%s640_s2] ss:$0 sm:$0xff] }
  0x3e   :  { %367 = vmatprep.subr.bf16.mxu0 %v533_v0  ;;  %387 = vmatprep.subr.bf16.mxu1 %v533_v0  ;;  %v336_v36 = vld [vmem:[%s642_s4] ss:$0 sm:$0xff]  ;;  %p508_p0 = pnand %p507_p13, %p501_p10 }
  0x41   :  { %368 = vmatpush3.bf16.msra.mxu0 %v415_v3  ;;  %388 = vmatpush3.bf16.msra.mxu1 %v424_v12 }
  0x42   :  { %369 = vmatprep.subr.bf16.mxu0 %v533_v0  ;;  %389 = vmatprep.subr.bf16.mxu1 %v533_v0 }
  0x45   :  { %370 = vmatpush3.bf16.msra.mxu0 %v416_v5  ;;  %390 = vmatpush3.bf16.msra.mxu1 %v425_v13 }
  0x46   :  { %371 = vmatprep.subr.bf16.mxu0 %v533_v0  ;;  %391 = vmatprep.subr.bf16.mxu1 %v533_v0 }
  0x49   :  { %372 = vmatpush3.bf16.msra.mxu0 %v417_v7  ;;  %392 = vmatpush3.bf16.msra.mxu1 %v426_v14 }
  0x4a   :  { %373 = vmatprep.subr.bf16.mxu0 %v533_v0  ;;  %393 = vmatprep.subr.bf16.mxu1 %v533_v0 }
  0x4d   :  { %374 = vmatpush3.bf16.msra.mxu0 %v418_v8  ;;  %394 = vmatpush3.bf16.msra.mxu1 %v427_v15 }
  0x4e   :  { %375 = vmatprep.subr.bf16.mxu0 %v533_v0  ;;  %395 = vmatprep.subr.bf16.mxu1 %v533_v0 }
  0x51   :  { %376 = vmatpush3.bf16.msra.mxu0 %v419_v9  ;;  %396 = vmatpush3.bf16.msra.mxu1 %v428_v16 }
  0x52   :  { %377 = vmatprep.subr.bf16.mxu0 %v533_v0  ;;  %397 = vmatprep.subr.bf16.mxu1 %v533_v0 }
  0x55   :  { %378 = vmatpush3.bf16.msra.mxu0 %v420_v10  ;;  %398 = vmatpush3.bf16.msra.mxu1 %v429_v17 }
  0x58   :  { %380 = vmatmul.mubr.bf16.vlgmr.msra.gmra.mrb[0].mxu0 %v421_v11 }
 0x12b   :  { %v176_v19 = vpop.f32.mrb[0].mxu0 }
 0x12c   :  { %v177_v20 = vadd.f32 %v326_v18, %v176_v19  ;;  %v381_v21 = vpop.f32.mrb[1].mxu0 }
 0x12d   :  { %v179_v22 = vpop.f32.mrb[2].mxu0 }
 0x12e   :  { %v185_v23 = vmul.f32 0.70710677, %v177_v20  ;;  %v180_v24 = vadd.f32 %v326_v18, %v179_v22  ;;  %v382_v25 = vpop.f32.mrb[3].mxu0  ;;  %v183_v30 = vmul.f32 0.5, %v177_v20 }
 0x130   :  { %430 = verf.f32 %v185_v23  ;;  %v186_v26 = vmul.f32 0.70710677, %v180_v24  ;;  %v184_v31 = vmul.f32 0.5, %v180_v24 }
 0x132   :  { %432 = verf.f32 %v186_v26 }
 0x13a   :  { %v431_v27 = vpop.eup %430 }
 0x13b   :  { %v189_v28 = vadd.f32 1.0, %v431_v27 }
 0x13c   :  { %v433_v29 = vpop.eup %432 }
 0x13d   :  { %v190_v32 = vadd.f32 1.0, %v433_v29  ;;  %v191_v33 = vmul.f32 %v189_v28, %v183_v30 }
 0x13f   :  { %v192_v34 = vmul.f32 %v190_v32, %v184_v31 }
 0x141   :  { %v193_v35 = vpack.c.bf16 %v192_v34, %v191_v33 }
 0x143   :  { %400 = vmatmul.mubr.bf16.vlgmr.msra.gmra.mrb[0].mxu1 %v193_v35 }
 0x216   :  { %v299_v37 = vpop.f32.mrb[0].mxu1 }
 0x217   :  { %v300_v38 = vadd.f32 %v336_v36, %v299_v37  ;;  %v401_v39 = vpop.f32.mrb[1].mxu1 }
 0x218   :  { %v302_v40 = vpop.f32.mrb[2].mxu1 }
 0x219   :  { %306 = vst [vmem:[#allocation8] sm:$0xff] %v300_v38  ;;  %v303_v41 = vadd.f32 %v336_v36, %v302_v40  ;;  %v402_v42 = vpop.f32.mrb[3].mxu1 }
 0x21b   :  { %307 = vst [vmem:[#allocation8 + $0x8] sm:$0xff] %v303_v41 }
 0x21c   :  { %511 = shalt.err (!%p508_p0)
}
 0x21d   :  { %s512_s10 = scalar_lea.hbm %s643_s5, 256 }
 0x21e   :  { %p513_p1 = scmp.ne.s32.totalorder %s643_s5, %s512_s10  ;;  %p516_p2 = scmp.lt.u32.totalorder %s512_s10, %s643_s5 }
 0x220   :  { %p518_p3 = pnand %p516_p2, %p513_p1 }
 0x222   :  { %521 = shalt.err (!%p518_p3)
}
 0x223   :  { %s536_s15 = smov 128   ;;  %s537_s16 = smov 8  }
 0x224   :  { %319 = dma.vmem_to_hbm [thread:$0]  %s314_s7, 256, %s643_s5, [#allocation4], %s536_s15, %s536_s15, %s537_s16  }
 0x225   :  { %526 = dma.done.wait [#allocation4], 256  }
 0x226   :  { %527 = vsyncadd [#allocation4], 4294967040 }
 0x227   :  { %323 = vsyncpa [#allocation3], 1 }
 0x228   :  { %324 = vsyncpa [#allocation6], 1 }
 0x229   :  { %325 = vsyncpa [#allocation4], 1 }

</bundles_post_ra>
